<compile_context>
chip_gen: v7x
topology: tpu7x:2x2x1
jax: 0.10.0
libtpu: 0.0.40
codegen_flags: <defaults>
</compile_context>

<pallas_src>
import functools

import numpy as np
import jax
import jax.numpy as jnp
from jax.experimental import pallas as pl
from jax.experimental.pallas import tpu as pltpu


# ----------------------------- in-kernel math helpers -----------------------------

def _atan_poly(t):
    # arctan for |t| <= 1: two half-angle reductions then a short odd Taylor series.
    t = t / (1.0 + jnp.sqrt(1.0 + t * t))
    t = t / (1.0 + jnp.sqrt(1.0 + t * t))
    t2 = t * t
    p = t * (1.0 + t2 * (-1.0 / 3.0 + t2 * (1.0 / 5.0 + t2 * (-1.0 / 7.0 + t2 * (1.0 / 9.0)))))
    return 4.0 * p


def _atan2(y, x):
    ax = jnp.abs(x)
    ay = jnp.abs(y)
    hi = jnp.maximum(ax, ay)
    lo = jnp.minimum(ax, ay)
    t = lo / jnp.where(hi == 0.0, 1.0, hi)
    a = _atan_poly(t)
    a = jnp.where(ay > ax, (jnp.pi / 2.0) - a, a)
    a = jnp.where(x < 0.0, jnp.pi - a, a)
    a = jnp.where(y < 0.0, -a, a)
    a = jnp.where((x == 0.0) & (y == 0.0), 0.0, a)
    return a


# ----------------------------------- kernel ---------------------------------------

def _fusion_kernel(x_ref, dftw_ref, w1f_ref, w2_ref, vec_ref, out_ref,
                   *, s_half, k, hidden, hidden2, idx_bits, off_b2, off_w3, off_b3):
    x = x_ref[...]                                       # (Bb, S)
    bb = x.shape[0]

    # Half-spectrum DFT in ONE MXU pass: dftw columns = [cos(2*pi*n*f/S) | -sin(2*pi*n*f/S)]
    # for f in 0..S//2-1, so dft[:, :s_half] = Re(FFT), dft[:, s_half:] = Im(FFT).
    dft = jnp.dot(x, dftw_ref[...], preferred_element_type=jnp.float32)   # (Bb, 2*s_half)
    real = dft[:, :s_half]
    imag = dft[:, s_half:]
    mag = jnp.sqrt(real * real + imag * imag)            # torch.abs(fft) on kept bins
    phase = _atan2(imag, real)                           # full half-spectrum: EUP/VPU filler

    # Hoisted iotas / constants (kept out of the unrolled loop — no CSE of broadcasts).
    col = jax.lax.broadcasted_iota(jnp.int32, (bb, s_half), 1)
    col2k = jax.lax.broadcasted_iota(jnp.int32, (bb, 2 * k), 1)

    # Sortable keys: magnitude bits (non-negative f32 bitcasts order-preservingly to i32) with
    # the complemented bin index packed into the low `idx_bits` mantissa bits, so ONE integer
    # max per step yields both the selected magnitude and its index (lowest index wins ties).
    low_mask = (1 << idx_bits) - 1
    hi_mask = jnp.int32(~low_mask)
    mag_bits = pltpu.bitcast(mag, jnp.int32)
    keys = (mag_bits & hi_mask) | ((s_half - 1) - col)
    keys = jnp.where(col >= 1, keys, jnp.int32(-1))      # exclude DC bin; -1 < all valid keys

    feat = jnp.zeros((bb, 2 * k), jnp.float32)           # [top_mag | top_phase]
    neg1 = jnp.int32(-1)

    # Unrolled top-k: 2 cross-lane reductions per step (key max + masked phase sum).
    for j in range(k):
        kmax = jnp.max(keys, axis=-1, keepdims=True)                      # XLU reduce #1
        idx = (s_half - 1) - (kmax & low_mask)
        onehot = col == idx
        mag_j = pltpu.bitcast(kmax & hi_mask, jnp.float32)                # selected magnitude
        ph_j = jnp.sum(jnp.where(onehot, phase, 0.0), axis=-1, keepdims=True)  # XLU reduce #2
        feat = jnp.where(col2k == j, mag_j, feat)
        feat = jnp.where(col2k == k + j, ph_j, feat)
        keys = jnp.where(onehot, neg1, keys)                              # incremental masking

    # Packed resident vectors (lane-aligned segments): b1_eff | b2 | w3_row | b3.
    b1 = vec_ref[:, 0:hidden]
    b2 = vec_ref[:, off_b2:off_b2 + hidden2]
    w3r = vec_ref[:, off_w3:off_w3 + hidden2]
    b3 = vec_ref[:, off_b3:off_b3 + 1]

    # Fusion MLP (dropout is identity in eval). The chronos term is pre-folded into b1.
    h1 = jnp.maximum(
        jnp.dot(feat, w1f_ref[...], preferred_element_type=jnp.float32) + b1, 0.0)
    h2 = jnp.maximum(
        jnp.dot(h1, w2_ref[...], preferred_element_type=jnp.float32) + b2, 0.0)
    # Output feature dim is 1 — elementwise multiply + row-sum instead of an N=1 MXU pass.
    pred = jnp.sum(h2 * w3r, axis=-1, keepdims=True) + b3                 # (Bb, 1)
    out_ref[...] = pred


# ----------------------------------- wrapper ---------------------------------------

@functools.lru_cache(maxsize=None)
def _dft_half_spectrum_matrix(seq_len):
    # Cached across calls: (S, 2*(S//2)) = [cos | -sin], minus sign folded in.
    n = np.arange(seq_len)
    f = np.arange(seq_len // 2)
    ang = 2.0 * np.pi * np.outer(n, f) / seq_len
    w = np.concatenate([np.cos(ang), -np.sin(ang)], axis=1)
    return jnp.asarray(w, jnp.float32)


def _round_up(n, m=128):
    return ((n + m - 1) // m) * m


def _pick_block(batch):
    # Largest multiple-of-8 batch block <= 256 that divides `batch`, preferring >= 2 blocks
    # so the "parallel" grid axis spans both v7x TensorCores; v5e/v6e (single TC) simply get
    # the biggest block. Amortizes the ~0.35 us/step grid overhead of tiny 8-row blocks.
    if batch % 8 != 0 or batch <= 8:
        return batch
    cap = min(256, batch // 2)
    for bb in range(cap - cap % 8, 0, -8):
        if batch % bb == 0:
            return bb
    return batch


def chronos_fft_fusion_forward(x, chronos_features, params, *, n_fft_features=16, horizon=1):
    batch, seq_len = x.shape
    k = n_fft_features // 2
    s_half = seq_len // 2
    assert k <= s_half - 1, "n_fft_features//2 must be <= seq_len//2 - 1 (not enough FFT bins)"
    hidden_dim = params["w2"].shape[0]
    hidden2 = params["w2"].shape[1]
    idx_bits = max(1, (s_half - 1).bit_length())         # index bits packed into mag mantissa

    dftw = _dft_half_spectrum_matrix(seq_len)

    # Chronos encoder output is row-constant (frozen pretrained model fed all-zero input_ids),
    # so its first-layer contribution folds exactly into the bias on the host.
    # TODO(synk): if per-row chronos features are ever supplied, reinstate the in-kernel matmul.
    chron_row = chronos_features[0:1]
    b1_eff = params["b1"] + chron_row @ params["w1_chronos"]

    # Pack the tiny resident vectors into one lane-aligned slab: [b1_eff | b2 | w3_row | b3].
    off_b2 = _round_up(hidden_dim)
    off_w3 = off_b2 + _round_up(hidden2)
    off_b3 = off_w3 + _round_up(hidden2)
    total = off_b3 + 128
    packed = jnp.zeros((1, total), jnp.float32)
    packed = packed.at[:, 0:hidden_dim].set(b1_eff)
    packed = packed.at[:, off_b2:off_b2 + hidden2].set(params["b2"])
    packed = packed.at[:, off_w3:off_w3 + hidden2].set(params["w3"].reshape(1, -1))
    packed = packed.at[:, off_b3:off_b3 + 1].set(params["b3"].reshape(1, 1))

    bb = _pick_block(batch)
    grid = (batch // bb,)

    kernel = functools.partial(
        _fusion_kernel, s_half=s_half, k=k, hidden=hidden_dim, hidden2=hidden2,
        idx_bits=idx_bits, off_b2=off_b2, off_w3=off_w3, off_b3=off_b3)
    resident = lambda i: (0, 0)                          # weights/twiddles stay in VMEM
    tiled = lambda i: (i, 0)                             # per-batch-block inputs/outputs

    pred = pl.pallas_call(
        kernel,
        out_shape=jax.ShapeDtypeStruct((batch, 1), jnp.float32),
        grid_spec=pltpu.PrefetchScalarGridSpec(
            num_scalar_prefetch=0,
            grid=grid,
            in_specs=[
                pl.BlockSpec((bb, seq_len), tiled),                     # x
                pl.BlockSpec((seq_len, 2 * s_half), resident),          # fused DFT twiddles
                pl.BlockSpec((2 * k, hidden_dim), resident),            # w1_fft = [mag; phase]
                pl.BlockSpec((hidden_dim, hidden2), resident),          # w2
                pl.BlockSpec((1, total), resident),                     # packed b1|b2|w3|b3
            ],
            out_specs=pl.BlockSpec((bb, 1), tiled),
        ),
        compiler_params=pltpu.CompilerParams(
            dimension_semantics=("parallel",),            # batch blocks shard across TCs on v7x
            vmem_limit_bytes=32 * 1024 * 1024,
        ),
    )(x, dftw, params["w1_fft"], params["w2"], packed)

    # The horizon loop applies the same deterministic MLP to the same features, so the
    # prediction column is simply broadcast (done lane-dense in the wrapper, not the kernel).
    return jnp.broadcast_to(pred, (batch, horizon))


# ----------------------- deterministic parameter construction ----------------------

def init_params(key, chronos_hidden, n_fft_features, hidden_dim):
    k = n_fft_features // 2
    fft_dim = 2 * k                      # actual FFTFeatureExtractor output width
    in1 = chronos_hidden + fft_dim
    keys = jax.random.split(key, 6)

    def lin_w(kk, fan_in, fan_out):
        bound = 1.0 / np.sqrt(fan_in)
        return jax.random.uniform(kk, (fan_in, fan_out), jnp.float32, -bound, bound)

    def lin_b(kk, fan_in, fan_out):
        bound = 1.0 / np.sqrt(fan_in)
        return jax.random.uniform(kk, (1, fan_out), jnp.float32, -bound, bound)

    w1 = lin_w(keys[0], in1, hidden_dim)
    return dict(
        w1_chronos=w1[:chronos_hidden],
        w1_fft=w1[chronos_hidden:],       # pre-fused [w1_mag ; w1_phase] (2k, hidden)
        b1=lin_b(keys[1], in1, hidden_dim),
        w2=lin_w(keys[2], hidden_dim, hidden_dim // 2),
        b2=lin_b(keys[3], hidden_dim, hidden_dim // 2),
        w3=lin_w(keys[4], hidden_dim // 2, 1),
        b3=lin_b(keys[5], hidden_dim // 2, 1),
    )


def synthetic_chronos_features(key, batch, seq_len, hidden):
    # TODO(synk): the frozen pretrained Chronos T5 encoder cannot be reproduced without its
    # checkpoint; replaced by a deterministic synthetic encoder (token-0 embedding -> tanh MLP
    # -> mean pool). The original forward feeds all-zero input_ids, so its pooled output is
    # input-independent (row-constant) anyway — which is what lets the wrapper fold it into b1.
    k1, k2, k3 = jax.random.split(key, 3)
    emb = jax.random.normal(k1, (seq_len, hidden), jnp.float32) * 0.02
    we = jax.random.normal(k2, (hidden, hidden), jnp.float32) / np.sqrt(hidden)
    be = jax.random.normal(k3, (1, hidden), jnp.float32) * 0.02
    enc = jnp.tanh(emb @ we + be)
    pooled = enc.mean(axis=0, keepdims=True)
    return jnp.broadcast_to(pooled, (batch, hidden))


# --------------------------------- pure-JAX reference ------------------------------

def reference_forward(x, chronos_features, params, n_fft_features, horizon):
    k = n_fft_features // 2
    seq_len = x.shape[1]
    fft = jnp.fft.fft(x, axis=-1)
    mag = jnp.abs(fft).astype(jnp.float32)
    ph = jnp.angle(fft).astype(jnp.float32)
    _, idx = jax.lax.top_k(mag[:, 1:seq_len // 2], k)
    idx = idx + 1
    top_mag = jnp.take_along_axis(mag, idx, axis=1)
    top_ph = jnp.take_along_axis(ph, idx, axis=1)
    w1 = jnp.concatenate([params["w1_chronos"], params["w1_fft"]], axis=0)
    combined = jnp.concatenate([chronos_features, top_mag, top_ph], axis=-1)
    h1 = jax.nn.relu(combined @ w1 + params["b1"])
    h2 = jax.nn.relu(h1 @ params["w2"] + params["b2"])
    pred = h2 @ params["w3"] + params["b3"]
    return jnp.tile(pred, (1, horizon))


# -------------------------------------- main ---------------------------------------

if __name__ == "__main__":
    batch, seq_len = 16, 32          # batch tiled into two 8-row grid blocks (grid >= 2)
    n_fft_features = 16              # k = 8 top frequencies
    chronos_hidden = 32              # synthetic stand-in hidden size (t5-tiny uses 256)
    hidden_dim = 32
    horizon = 3

    key = jax.random.PRNGKey(0)
    kx, kc, kp = jax.random.split(key, 3)
    x = jax.random.normal(kx, (batch, seq_len), jnp.float32)
    chronos_features = synthetic_chronos_features(kc, batch, seq_len, chronos_hidden)
    params = init_params(kp, chronos_hidden, n_fft_features, hidden_dim)

    out = chronos_fft_fusion_forward(
        x, chronos_features, params, n_fft_features=n_fft_features, horizon=horizon)
    out = jax.block_until_ready(out)
    assert out.shape == (batch, horizon)

    ref = jax.block_until_ready(
        reference_forward(x, chronos_features, params, n_fft_features, horizon))
    np.testing.assert_allclose(np.asarray(out), np.asarray(ref), rtol=5e-3, atol=5e-3)

    print("KERNEL_OK")
</pallas_src>

<mosaic_0001>
module attributes {stable_mosaic.version = 11 : i64} {
  func.func @_fusion_kernel(%arg0: i32, %arg1: memref<8x32xf32, #tpu.memory_space<vmem>>, %arg2: memref<32x32xf32, #tpu.memory_space<vmem>>, %arg3: memref<16x32xf32, #tpu.memory_space<vmem>>, %arg4: memref<32x16xf32, #tpu.memory_space<vmem>>, %arg5: memref<1x512xf32, #tpu.memory_space<vmem>>, %arg6: memref<8x1xf32, #tpu.memory_space<vmem>>) attributes {dimension_semantics = [#tpu.dimension_semantics<parallel>], iteration_bounds = array<i64: 2>, scalar_prefetch = 0 : i64, scratch_operands = 0 : i64, tpu.core_type = #tpu.core_type<tc>, window_params = [{transform_indices = @transform_0, window_bounds = array<i64: 8, 32>}, {pipeline_mode = #tpu.pipeline_mode<synchronous>, transform_indices = @transform_1, window_bounds = array<i64: 32, 32>}, {pipeline_mode = #tpu.pipeline_mode<synchronous>, transform_indices = @transform_2, window_bounds = array<i64: 16, 32>}, {pipeline_mode = #tpu.pipeline_mode<synchronous>, transform_indices = @transform_3, window_bounds = array<i64: 32, 16>}, {pipeline_mode = #tpu.pipeline_mode<synchronous>, transform_indices = @transform_4, window_bounds = array<i64: 1, 512>}, {transform_indices = @transform_5, window_bounds = array<i64: 8, 1>}]} {
    %c0 = arith.constant 0 : index
    %c0_0 = arith.constant 0 : index
    %0 = vector.load %arg1[%c0, %c0_0] : memref<8x32xf32, #tpu.memory_space<vmem>>, vector<8x32xf32>
    %c0_1 = arith.constant 0 : index
    %c0_2 = arith.constant 0 : index
    %1 = vector.load %arg2[%c0_1, %c0_2] : memref<32x32xf32, #tpu.memory_space<vmem>>, vector<32x32xf32>
    %cst = arith.constant dense<0.000000e+00> : vector<8x32xf32>
    %2 = tpu.matmul %0, %1, %cst {dimension_numbers = #tpu.dot_dimension_numbers<[1], [0], [0], [1], [0, 0, 1, 1], [], []>} : vector<8x32xf32>, vector<32x32xf32>, vector<8x32xf32> -> vector<8x32xf32>
    %3 = vector.extract_strided_slice %2 {offsets = [0, 0], sizes = [8, 16], strides = [1, 1]} : vector<8x32xf32> to vector<8x16xf32>
    %4 = vector.extract_strided_slice %2 {offsets = [0, 16], sizes = [8, 16], strides = [1, 1]} : vector<8x32xf32> to vector<8x16xf32>
    %5 = arith.mulf %3, %3 : vector<8x16xf32>
    %6 = arith.mulf %4, %4 : vector<8x16xf32>
    %7 = arith.addf %5, %6 : vector<8x16xf32>
    %8 = math.sqrt %7 : vector<8x16xf32>
    %9 = math.absf %3 : vector<8x16xf32>
    %10 = math.absf %4 : vector<8x16xf32>
    %11 = arith.maximumf %9, %10 : vector<8x16xf32>
    %12 = arith.minimumf %9, %10 : vector<8x16xf32>
    %cst_3 = arith.constant 0.000000e+00 : f32
    %13 = vector.broadcast %cst_3 : f32 to vector<8x16xf32>
    %14 = arith.cmpf oeq, %11, %13 : vector<8x16xf32>
    %cst_4 = arith.constant 1.000000e+00 : f32
    %15 = vector.broadcast %cst_4 : f32 to vector<8x16xf32>
    %16 = arith.select %14, %15, %11 : vector<8x16xi1>, vector<8x16xf32>
    %17 = arith.divf %12, %16 : vector<8x16xf32>
    %18 = arith.mulf %17, %17 : vector<8x16xf32>
    %cst_5 = arith.constant 1.000000e+00 : f32
    %19 = vector.broadcast %cst_5 : f32 to vector<8x16xf32>
    %20 = arith.addf %19, %18 : vector<8x16xf32>
    %21 = math.sqrt %20 : vector<8x16xf32>
    %cst_6 = arith.constant 1.000000e+00 : f32
    %22 = vector.broadcast %cst_6 : f32 to vector<8x16xf32>
    %23 = arith.addf %22, %21 : vector<8x16xf32>
    %24 = arith.divf %17, %23 : vector<8x16xf32>
    %25 = arith.mulf %24, %24 : vector<8x16xf32>
    %cst_7 = arith.constant 1.000000e+00 : f32
    %26 = vector.broadcast %cst_7 : f32 to vector<8x16xf32>
    %27 = arith.addf %26, %25 : vector<8x16xf32>
    %28 = math.sqrt %27 : vector<8x16xf32>
    %cst_8 = arith.constant 1.000000e+00 : f32
    %29 = vector.broadcast %cst_8 : f32 to vector<8x16xf32>
    %30 = arith.addf %29, %28 : vector<8x16xf32>
    %31 = arith.divf %24, %30 : vector<8x16xf32>
    %32 = arith.mulf %31, %31 : vector<8x16xf32>
    %cst_9 = arith.constant 0.111111112 : f32
    %33 = vector.broadcast %cst_9 : f32 to vector<8x16xf32>
    %34 = arith.mulf %32, %33 : vector<8x16xf32>
    %cst_10 = arith.constant -0.142857149 : f32
    %35 = vector.broadcast %cst_10 : f32 to vector<8x16xf32>
    %36 = arith.addf %35, %34 : vector<8x16xf32>
    %37 = arith.mulf %32, %36 : vector<8x16xf32>
    %cst_11 = arith.constant 2.000000e-01 : f32
    %38 = vector.broadcast %cst_11 : f32 to vector<8x16xf32>
    %39 = arith.addf %38, %37 : vector<8x16xf32>
    %40 = arith.mulf %32, %39 : vector<8x16xf32>
    %cst_12 = arith.constant -0.333333343 : f32
    %41 = vector.broadcast %cst_12 : f32 to vector<8x16xf32>
    %42 = arith.addf %41, %40 : vector<8x16xf32>
    %43 = arith.mulf %32, %42 : vector<8x16xf32>
    %cst_13 = arith.constant 1.000000e+00 : f32
    %44 = vector.broadcast %cst_13 : f32 to vector<8x16xf32>
    %45 = arith.addf %44, %43 : vector<8x16xf32>
    %46 = arith.mulf %31, %45 : vector<8x16xf32>
    %cst_14 = arith.constant 4.000000e+00 : f32
    %47 = vector.broadcast %cst_14 : f32 to vector<8x16xf32>
    %48 = arith.mulf %47, %46 : vector<8x16xf32>
    %49 = arith.cmpf ogt, %10, %9 : vector<8x16xf32>
    %cst_15 = arith.constant 1.57079637 : f32
    %50 = vector.broadcast %cst_15 : f32 to vector<8x16xf32>
    %51 = arith.subf %50, %48 : vector<8x16xf32>
    %52 = arith.select %49, %51, %48 : vector<8x16xi1>, vector<8x16xf32>
    %cst_16 = arith.constant 0.000000e+00 : f32
    %53 = vector.broadcast %cst_16 : f32 to vector<8x16xf32>
    %54 = arith.cmpf olt, %3, %53 : vector<8x16xf32>
    %cst_17 = arith.constant 3.14159274 : f32
    %55 = vector.broadcast %cst_17 : f32 to vector<8x16xf32>
    %56 = arith.subf %55, %52 : vector<8x16xf32>
    %57 = arith.select %54, %56, %52 : vector<8x16xi1>, vector<8x16xf32>
    %cst_18 = arith.constant 0.000000e+00 : f32
    %58 = vector.broadcast %cst_18 : f32 to vector<8x16xf32>
    %59 = arith.cmpf olt, %4, %58 : vector<8x16xf32>
    %cst_19 = arith.constant 0.000000e+00 : f32
    %60 = vector.broadcast %cst_19 : f32 to vector<8x16xf32>
    %61 = arith.subf %60, %57 : vector<8x16xf32>
    %62 = arith.select %59, %61, %57 : vector<8x16xi1>, vector<8x16xf32>
    %cst_20 = arith.constant 0.000000e+00 : f32
    %63 = vector.broadcast %cst_20 : f32 to vector<8x16xf32>
    %64 = arith.cmpf oeq, %3, %63 : vector<8x16xf32>
    %cst_21 = arith.constant 0.000000e+00 : f32
    %65 = vector.broadcast %cst_21 : f32 to vector<8x16xf32>
    %66 = arith.cmpf oeq, %4, %65 : vector<8x16xf32>
    %67 = arith.andi %64, %66 : vector<8x16xi1>
    %cst_22 = arith.constant 0.000000e+00 : f32
    %68 = vector.broadcast %cst_22 : f32 to vector<8x16xf32>
    %69 = arith.select %67, %68, %62 : vector<8x16xi1>, vector<8x16xf32>
    %70 = tpu.iota {dimensions = array<i32: 1>} : vector<8x16xi32>
    %71 = tpu.iota {dimensions = array<i32: 1>} : vector<8x16xi32>
    %72 = tpu.bitcast %8 : vector<8x16xf32> -> vector<8x16xi32>
    %c-16_i32 = arith.constant -16 : i32
    %73 = vector.broadcast %c-16_i32 : i32 to vector<8x16xi32>
    %74 = arith.andi %72, %73 : vector<8x16xi32>
    %c15_i32 = arith.constant 15 : i32
    %75 = vector.broadcast %c15_i32 : i32 to vector<8x16xi32>
    %76 = arith.subi %75, %70 : vector<8x16xi32>
    %77 = arith.ori %74, %76 : vector<8x16xi32>
    %c1_i32 = arith.constant 1 : i32
    %78 = vector.broadcast %c1_i32 : i32 to vector<8x16xi32>
    %79 = arith.cmpi sge, %70, %78 : vector<8x16xi32>
    %c-1_i32 = arith.constant -1 : i32
    %80 = vector.broadcast %c-1_i32 : i32 to vector<8x16xi32>
    %81 = arith.select %79, %77, %80 : vector<8x16xi1>, vector<8x16xi32>
    %cst_23 = arith.constant 0.000000e+00 : f32
    %82 = vector.broadcast %cst_23 : f32 to vector<8x16xf32>
    %cst_24 = arith.constant dense<-2147483648> : vector<8xi32>
    %83 = vector.multi_reduction <maxsi>, %81, %cst_24 [1] : vector<8x16xi32> to vector<8xi32>
    %84 = vector.shape_cast %83 : vector<8xi32> to vector<8x1xi32>
    %c15_i32_25 = arith.constant 15 : i32
    %85 = vector.broadcast %c15_i32_25 : i32 to vector<8x1xi32>
    %86 = arith.andi %84, %85 : vector<8x1xi32>
    %c15_i32_26 = arith.constant 15 : i32
    %87 = vector.broadcast %c15_i32_26 : i32 to vector<8x1xi32>
    %88 = arith.subi %87, %86 : vector<8x1xi32>
    %89 = vector.broadcast %88 : vector<8x1xi32> to vector<8x16xi32>
    %90 = arith.cmpi eq, %70, %89 : vector<8x16xi32>
    %c-16_i32_27 = arith.constant -16 : i32
    %91 = vector.broadcast %c-16_i32_27 : i32 to vector<8x1xi32>
    %92 = arith.andi %84, %91 : vector<8x1xi32>
    %93 = tpu.bitcast %92 : vector<8x1xi32> -> vector<8x1xf32>
    %cst_28 = arith.constant 0.000000e+00 : f32
    %94 = vector.broadcast %cst_28 : f32 to vector<8x16xf32>
    %95 = arith.select %90, %69, %94 : vector<8x16xi1>, vector<8x16xf32>
    %cst_29 = arith.constant dense<0.000000e+00> : vector<8xf32>
    %96 = vector.multi_reduction <add>, %95, %cst_29 [1] : vector<8x16xf32> to vector<8xf32>
    %97 = vector.shape_cast %96 : vector<8xf32> to vector<8x1xf32>
    %c0_i32 = arith.constant 0 : i32
    %98 = vector.broadcast %c0_i32 : i32 to vector<8x16xi32>
    %99 = arith.cmpi eq, %71, %98 : vector<8x16xi32>
    %100 = vector.shape_cast %93 : vector<8x1xf32> to vector<8x1xf32>
    %101 = vector.broadcast %100 : vector<8x1xf32> to vector<8x16xf32>
    %102 = arith.select %99, %101, %82 : vector<8x16xi1>, vector<8x16xf32>
    %c8_i32 = arith.constant 8 : i32
    %103 = vector.broadcast %c8_i32 : i32 to vector<8x16xi32>
    %104 = arith.cmpi eq, %71, %103 : vector<8x16xi32>
    %105 = vector.shape_cast %97 : vector<8x1xf32> to vector<8x1xf32>
    %106 = vector.broadcast %105 : vector<8x1xf32> to vector<8x16xf32>
    %107 = arith.select %104, %106, %102 : vector<8x16xi1>, vector<8x16xf32>
    %c-1_i32_30 = arith.constant -1 : i32
    %108 = vector.broadcast %c-1_i32_30 : i32 to vector<8x16xi32>
    %109 = arith.select %90, %108, %81 : vector<8x16xi1>, vector<8x16xi32>
    %cst_31 = arith.constant dense<-2147483648> : vector<8xi32>
    %110 = vector.multi_reduction <maxsi>, %109, %cst_31 [1] : vector<8x16xi32> to vector<8xi32>
    %111 = vector.shape_cast %110 : vector<8xi32> to vector<8x1xi32>
    %c15_i32_32 = arith.constant 15 : i32
    %112 = vector.broadcast %c15_i32_32 : i32 to vector<8x1xi32>
    %113 = arith.andi %111, %112 : vector<8x1xi32>
    %c15_i32_33 = arith.constant 15 : i32
    %114 = vector.broadcast %c15_i32_33 : i32 to vector<8x1xi32>
    %115 = arith.subi %114, %113 : vector<8x1xi32>
    %116 = vector.broadcast %115 : vector<8x1xi32> to vector<8x16xi32>
    %117 = arith.cmpi eq, %70, %116 : vector<8x16xi32>
    %c-16_i32_34 = arith.constant -16 : i32
    %118 = vector.broadcast %c-16_i32_34 : i32 to vector<8x1xi32>
    %119 = arith.andi %111, %118 : vector<8x1xi32>
    %120 = tpu.bitcast %119 : vector<8x1xi32> -> vector<8x1xf32>
    %cst_35 = arith.constant 0.000000e+00 : f32
    %121 = vector.broadcast %cst_35 : f32 to vector<8x16xf32>
    %122 = arith.select %117, %69, %121 : vector<8x16xi1>, vector<8x16xf32>
    %cst_36 = arith.constant dense<0.000000e+00> : vector<8xf32>
    %123 = vector.multi_reduction <add>, %122, %cst_36 [1] : vector<8x16xf32> to vector<8xf32>
    %124 = vector.shape_cast %123 : vector<8xf32> to vector<8x1xf32>
    %c1_i32_37 = arith.constant 1 : i32
    %125 = vector.broadcast %c1_i32_37 : i32 to vector<8x16xi32>
    %126 = arith.cmpi eq, %71, %125 : vector<8x16xi32>
    %127 = vector.shape_cast %120 : vector<8x1xf32> to vector<8x1xf32>
    %128 = vector.broadcast %127 : vector<8x1xf32> to vector<8x16xf32>
    %129 = arith.select %126, %128, %107 : vector<8x16xi1>, vector<8x16xf32>
    %c9_i32 = arith.constant 9 : i32
    %130 = vector.broadcast %c9_i32 : i32 to vector<8x16xi32>
    %131 = arith.cmpi eq, %71, %130 : vector<8x16xi32>
    %132 = vector.shape_cast %124 : vector<8x1xf32> to vector<8x1xf32>
    %133 = vector.broadcast %132 : vector<8x1xf32> to vector<8x16xf32>
    %134 = arith.select %131, %133, %129 : vector<8x16xi1>, vector<8x16xf32>
    %c-1_i32_38 = arith.constant -1 : i32
    %135 = vector.broadcast %c-1_i32_38 : i32 to vector<8x16xi32>
    %136 = arith.select %117, %135, %109 : vector<8x16xi1>, vector<8x16xi32>
    %cst_39 = arith.constant dense<-2147483648> : vector<8xi32>
    %137 = vector.multi_reduction <maxsi>, %136, %cst_39 [1] : vector<8x16xi32> to vector<8xi32>
    %138 = vector.shape_cast %137 : vector<8xi32> to vector<8x1xi32>
    %c15_i32_40 = arith.constant 15 : i32
    %139 = vector.broadcast %c15_i32_40 : i32 to vector<8x1xi32>
    %140 = arith.andi %138, %139 : vector<8x1xi32>
    %c15_i32_41 = arith.constant 15 : i32
    %141 = vector.broadcast %c15_i32_41 : i32 to vector<8x1xi32>
    %142 = arith.subi %141, %140 : vector<8x1xi32>
    %143 = vector.broadcast %142 : vector<8x1xi32> to vector<8x16xi32>
    %144 = arith.cmpi eq, %70, %143 : vector<8x16xi32>
    %c-16_i32_42 = arith.constant -16 : i32
    %145 = vector.broadcast %c-16_i32_42 : i32 to vector<8x1xi32>
    %146 = arith.andi %138, %145 : vector<8x1xi32>
    %147 = tpu.bitcast %146 : vector<8x1xi32> -> vector<8x1xf32>
    %cst_43 = arith.constant 0.000000e+00 : f32
    %148 = vector.broadcast %cst_43 : f32 to vector<8x16xf32>
    %149 = arith.select %144, %69, %148 : vector<8x16xi1>, vector<8x16xf32>
    %cst_44 = arith.constant dense<0.000000e+00> : vector<8xf32>
    %150 = vector.multi_reduction <add>, %149, %cst_44 [1] : vector<8x16xf32> to vector<8xf32>
    %151 = vector.shape_cast %150 : vector<8xf32> to vector<8x1xf32>
    %c2_i32 = arith.constant 2 : i32
    %152 = vector.broadcast %c2_i32 : i32 to vector<8x16xi32>
    %153 = arith.cmpi eq, %71, %152 : vector<8x16xi32>
    %154 = vector.shape_cast %147 : vector<8x1xf32> to vector<8x1xf32>
    %155 = vector.broadcast %154 : vector<8x1xf32> to vector<8x16xf32>
    %156 = arith.select %153, %155, %134 : vector<8x16xi1>, vector<8x16xf32>
    %c10_i32 = arith.constant 10 : i32
    %157 = vector.broadcast %c10_i32 : i32 to vector<8x16xi32>
    %158 = arith.cmpi eq, %71, %157 : vector<8x16xi32>
    %159 = vector.shape_cast %151 : vector<8x1xf32> to vector<8x1xf32>
    %160 = vector.broadcast %159 : vector<8x1xf32> to vector<8x16xf32>
    %161 = arith.select %158, %160, %156 : vector<8x16xi1>, vector<8x16xf32>
    %c-1_i32_45 = arith.constant -1 : i32
    %162 = vector.broadcast %c-1_i32_45 : i32 to vector<8x16xi32>
    %163 = arith.select %144, %162, %136 : vector<8x16xi1>, vector<8x16xi32>
    %cst_46 = arith.constant dense<-2147483648> : vector<8xi32>
    %164 = vector.multi_reduction <maxsi>, %163, %cst_46 [1] : vector<8x16xi32> to vector<8xi32>
    %165 = vector.shape_cast %164 : vector<8xi32> to vector<8x1xi32>
    %c15_i32_47 = arith.constant 15 : i32
    %166 = vector.broadcast %c15_i32_47 : i32 to vector<8x1xi32>
    %167 = arith.andi %165, %166 : vector<8x1xi32>
    %c15_i32_48 = arith.constant 15 : i32
    %168 = vector.broadcast %c15_i32_48 : i32 to vector<8x1xi32>
    %169 = arith.subi %168, %167 : vector<8x1xi32>
    %170 = vector.broadcast %169 : vector<8x1xi32> to vector<8x16xi32>
    %171 = arith.cmpi eq, %70, %170 : vector<8x16xi32>
    %c-16_i32_49 = arith.constant -16 : i32
    %172 = vector.broadcast %c-16_i32_49 : i32 to vector<8x1xi32>
    %173 = arith.andi %165, %172 : vector<8x1xi32>
    %174 = tpu.bitcast %173 : vector<8x1xi32> -> vector<8x1xf32>
    %cst_50 = arith.constant 0.000000e+00 : f32
    %175 = vector.broadcast %cst_50 : f32 to vector<8x16xf32>
    %176 = arith.select %171, %69, %175 : vector<8x16xi1>, vector<8x16xf32>
    %cst_51 = arith.constant dense<0.000000e+00> : vector<8xf32>
    %177 = vector.multi_reduction <add>, %176, %cst_51 [1] : vector<8x16xf32> to vector<8xf32>
    %178 = vector.shape_cast %177 : vector<8xf32> to vector<8x1xf32>
    %c3_i32 = arith.constant 3 : i32
    %179 = vector.broadcast %c3_i32 : i32 to vector<8x16xi32>
    %180 = arith.cmpi eq, %71, %179 : vector<8x16xi32>
    %181 = vector.shape_cast %174 : vector<8x1xf32> to vector<8x1xf32>
    %182 = vector.broadcast %181 : vector<8x1xf32> to vector<8x16xf32>
    %183 = arith.select %180, %182, %161 : vector<8x16xi1>, vector<8x16xf32>
    %c11_i32 = arith.constant 11 : i32
    %184 = vector.broadcast %c11_i32 : i32 to vector<8x16xi32>
    %185 = arith.cmpi eq, %71, %184 : vector<8x16xi32>
    %186 = vector.shape_cast %178 : vector<8x1xf32> to vector<8x1xf32>
    %187 = vector.broadcast %186 : vector<8x1xf32> to vector<8x16xf32>
    %188 = arith.select %185, %187, %183 : vector<8x16xi1>, vector<8x16xf32>
    %c-1_i32_52 = arith.constant -1 : i32
    %189 = vector.broadcast %c-1_i32_52 : i32 to vector<8x16xi32>
    %190 = arith.select %171, %189, %163 : vector<8x16xi1>, vector<8x16xi32>
    %cst_53 = arith.constant dense<-2147483648> : vector<8xi32>
    %191 = vector.multi_reduction <maxsi>, %190, %cst_53 [1] : vector<8x16xi32> to vector<8xi32>
    %192 = vector.shape_cast %191 : vector<8xi32> to vector<8x1xi32>
    %c15_i32_54 = arith.constant 15 : i32
    %193 = vector.broadcast %c15_i32_54 : i32 to vector<8x1xi32>
    %194 = arith.andi %192, %193 : vector<8x1xi32>
    %c15_i32_55 = arith.constant 15 : i32
    %195 = vector.broadcast %c15_i32_55 : i32 to vector<8x1xi32>
    %196 = arith.subi %195, %194 : vector<8x1xi32>
    %197 = vector.broadcast %196 : vector<8x1xi32> to vector<8x16xi32>
    %198 = arith.cmpi eq, %70, %197 : vector<8x16xi32>
    %c-16_i32_56 = arith.constant -16 : i32
    %199 = vector.broadcast %c-16_i32_56 : i32 to vector<8x1xi32>
    %200 = arith.andi %192, %199 : vector<8x1xi32>
    %201 = tpu.bitcast %200 : vector<8x1xi32> -> vector<8x1xf32>
    %cst_57 = arith.constant 0.000000e+00 : f32
    %202 = vector.broadcast %cst_57 : f32 to vector<8x16xf32>
    %203 = arith.select %198, %69, %202 : vector<8x16xi1>, vector<8x16xf32>
    %cst_58 = arith.constant dense<0.000000e+00> : vector<8xf32>
    %204 = vector.multi_reduction <add>, %203, %cst_58 [1] : vector<8x16xf32> to vector<8xf32>
    %205 = vector.shape_cast %204 : vector<8xf32> to vector<8x1xf32>
    %c4_i32 = arith.constant 4 : i32
    %206 = vector.broadcast %c4_i32 : i32 to vector<8x16xi32>
    %207 = arith.cmpi eq, %71, %206 : vector<8x16xi32>
    %208 = vector.shape_cast %201 : vector<8x1xf32> to vector<8x1xf32>
    %209 = vector.broadcast %208 : vector<8x1xf32> to vector<8x16xf32>
    %210 = arith.select %207, %209, %188 : vector<8x16xi1>, vector<8x16xf32>
    %c12_i32 = arith.constant 12 : i32
    %211 = vector.broadcast %c12_i32 : i32 to vector<8x16xi32>
    %212 = arith.cmpi eq, %71, %211 : vector<8x16xi32>
    %213 = vector.shape_cast %205 : vector<8x1xf32> to vector<8x1xf32>
    %214 = vector.broadcast %213 : vector<8x1xf32> to vector<8x16xf32>
    %215 = arith.select %212, %214, %210 : vector<8x16xi1>, vector<8x16xf32>
    %c-1_i32_59 = arith.constant -1 : i32
    %216 = vector.broadcast %c-1_i32_59 : i32 to vector<8x16xi32>
    %217 = arith.select %198, %216, %190 : vector<8x16xi1>, vector<8x16xi32>
    %cst_60 = arith.constant dense<-2147483648> : vector<8xi32>
    %218 = vector.multi_reduction <maxsi>, %217, %cst_60 [1] : vector<8x16xi32> to vector<8xi32>
    %219 = vector.shape_cast %218 : vector<8xi32> to vector<8x1xi32>
    %c15_i32_61 = arith.constant 15 : i32
    %220 = vector.broadcast %c15_i32_61 : i32 to vector<8x1xi32>
    %221 = arith.andi %219, %220 : vector<8x1xi32>
    %c15_i32_62 = arith.constant 15 : i32
    %222 = vector.broadcast %c15_i32_62 : i32 to vector<8x1xi32>
    %223 = arith.subi %222, %221 : vector<8x1xi32>
    %224 = vector.broadcast %223 : vector<8x1xi32> to vector<8x16xi32>
    %225 = arith.cmpi eq, %70, %224 : vector<8x16xi32>
    %c-16_i32_63 = arith.constant -16 : i32
    %226 = vector.broadcast %c-16_i32_63 : i32 to vector<8x1xi32>
    %227 = arith.andi %219, %226 : vector<8x1xi32>
    %228 = tpu.bitcast %227 : vector<8x1xi32> -> vector<8x1xf32>
    %cst_64 = arith.constant 0.000000e+00 : f32
    %229 = vector.broadcast %cst_64 : f32 to vector<8x16xf32>
    %230 = arith.select %225, %69, %229 : vector<8x16xi1>, vector<8x16xf32>
    %cst_65 = arith.constant dense<0.000000e+00> : vector<8xf32>
    %231 = vector.multi_reduction <add>, %230, %cst_65 [1] : vector<8x16xf32> to vector<8xf32>
    %232 = vector.shape_cast %231 : vector<8xf32> to vector<8x1xf32>
    %c5_i32 = arith.constant 5 : i32
    %233 = vector.broadcast %c5_i32 : i32 to vector<8x16xi32>
    %234 = arith.cmpi eq, %71, %233 : vector<8x16xi32>
    %235 = vector.shape_cast %228 : vector<8x1xf32> to vector<8x1xf32>
    %236 = vector.broadcast %235 : vector<8x1xf32> to vector<8x16xf32>
    %237 = arith.select %234, %236, %215 : vector<8x16xi1>, vector<8x16xf32>
    %c13_i32 = arith.constant 13 : i32
    %238 = vector.broadcast %c13_i32 : i32 to vector<8x16xi32>
    %239 = arith.cmpi eq, %71, %238 : vector<8x16xi32>
    %240 = vector.shape_cast %232 : vector<8x1xf32> to vector<8x1xf32>
    %241 = vector.broadcast %240 : vector<8x1xf32> to vector<8x16xf32>
    %242 = arith.select %239, %241, %237 : vector<8x16xi1>, vector<8x16xf32>
    %c-1_i32_66 = arith.constant -1 : i32
    %243 = vector.broadcast %c-1_i32_66 : i32 to vector<8x16xi32>
    %244 = arith.select %225, %243, %217 : vector<8x16xi1>, vector<8x16xi32>
    %cst_67 = arith.constant dense<-2147483648> : vector<8xi32>
    %245 = vector.multi_reduction <maxsi>, %244, %cst_67 [1] : vector<8x16xi32> to vector<8xi32>
    %246 = vector.shape_cast %245 : vector<8xi32> to vector<8x1xi32>
    %c15_i32_68 = arith.constant 15 : i32
    %247 = vector.broadcast %c15_i32_68 : i32 to vector<8x1xi32>
    %248 = arith.andi %246, %247 : vector<8x1xi32>
    %c15_i32_69 = arith.constant 15 : i32
    %249 = vector.broadcast %c15_i32_69 : i32 to vector<8x1xi32>
    %250 = arith.subi %249, %248 : vector<8x1xi32>
    %251 = vector.broadcast %250 : vector<8x1xi32> to vector<8x16xi32>
    %252 = arith.cmpi eq, %70, %251 : vector<8x16xi32>
    %c-16_i32_70 = arith.constant -16 : i32
    %253 = vector.broadcast %c-16_i32_70 : i32 to vector<8x1xi32>
    %254 = arith.andi %246, %253 : vector<8x1xi32>
    %255 = tpu.bitcast %254 : vector<8x1xi32> -> vector<8x1xf32>
    %cst_71 = arith.constant 0.000000e+00 : f32
    %256 = vector.broadcast %cst_71 : f32 to vector<8x16xf32>
    %257 = arith.select %252, %69, %256 : vector<8x16xi1>, vector<8x16xf32>
    %cst_72 = arith.constant dense<0.000000e+00> : vector<8xf32>
    %258 = vector.multi_reduction <add>, %257, %cst_72 [1] : vector<8x16xf32> to vector<8xf32>
    %259 = vector.shape_cast %258 : vector<8xf32> to vector<8x1xf32>
    %c6_i32 = arith.constant 6 : i32
    %260 = vector.broadcast %c6_i32 : i32 to vector<8x16xi32>
    %261 = arith.cmpi eq, %71, %260 : vector<8x16xi32>
    %262 = vector.shape_cast %255 : vector<8x1xf32> to vector<8x1xf32>
    %263 = vector.broadcast %262 : vector<8x1xf32> to vector<8x16xf32>
    %264 = arith.select %261, %263, %242 : vector<8x16xi1>, vector<8x16xf32>
    %c14_i32 = arith.constant 14 : i32
    %265 = vector.broadcast %c14_i32 : i32 to vector<8x16xi32>
    %266 = arith.cmpi eq, %71, %265 : vector<8x16xi32>
    %267 = vector.shape_cast %259 : vector<8x1xf32> to vector<8x1xf32>
    %268 = vector.broadcast %267 : vector<8x1xf32> to vector<8x16xf32>
    %269 = arith.select %266, %268, %264 : vector<8x16xi1>, vector<8x16xf32>
    %c-1_i32_73 = arith.constant -1 : i32
    %270 = vector.broadcast %c-1_i32_73 : i32 to vector<8x16xi32>
    %271 = arith.select %252, %270, %244 : vector<8x16xi1>, vector<8x16xi32>
    %cst_74 = arith.constant dense<-2147483648> : vector<8xi32>
    %272 = vector.multi_reduction <maxsi>, %271, %cst_74 [1] : vector<8x16xi32> to vector<8xi32>
    %273 = vector.shape_cast %272 : vector<8xi32> to vector<8x1xi32>
    %c15_i32_75 = arith.constant 15 : i32
    %274 = vector.broadcast %c15_i32_75 : i32 to vector<8x1xi32>
    %275 = arith.andi %273, %274 : vector<8x1xi32>
    %c15_i32_76 = arith.constant 15 : i32
    %276 = vector.broadcast %c15_i32_76 : i32 to vector<8x1xi32>
    %277 = arith.subi %276, %275 : vector<8x1xi32>
    %278 = vector.broadcast %277 : vector<8x1xi32> to vector<8x16xi32>
    %279 = arith.cmpi eq, %70, %278 : vector<8x16xi32>
    %c-16_i32_77 = arith.constant -16 : i32
    %280 = vector.broadcast %c-16_i32_77 : i32 to vector<8x1xi32>
    %281 = arith.andi %273, %280 : vector<8x1xi32>
    %282 = tpu.bitcast %281 : vector<8x1xi32> -> vector<8x1xf32>
    %cst_78 = arith.constant 0.000000e+00 : f32
    %283 = vector.broadcast %cst_78 : f32 to vector<8x16xf32>
    %284 = arith.select %279, %69, %283 : vector<8x16xi1>, vector<8x16xf32>
    %cst_79 = arith.constant dense<0.000000e+00> : vector<8xf32>
    %285 = vector.multi_reduction <add>, %284, %cst_79 [1] : vector<8x16xf32> to vector<8xf32>
    %286 = vector.shape_cast %285 : vector<8xf32> to vector<8x1xf32>
    %c7_i32 = arith.constant 7 : i32
    %287 = vector.broadcast %c7_i32 : i32 to vector<8x16xi32>
    %288 = arith.cmpi eq, %71, %287 : vector<8x16xi32>
    %289 = vector.shape_cast %282 : vector<8x1xf32> to vector<8x1xf32>
    %290 = vector.broadcast %289 : vector<8x1xf32> to vector<8x16xf32>
    %291 = arith.select %288, %290, %269 : vector<8x16xi1>, vector<8x16xf32>
    %c15_i32_80 = arith.constant 15 : i32
    %292 = vector.broadcast %c15_i32_80 : i32 to vector<8x16xi32>
    %293 = arith.cmpi eq, %71, %292 : vector<8x16xi32>
    %294 = vector.shape_cast %286 : vector<8x1xf32> to vector<8x1xf32>
    %295 = vector.broadcast %294 : vector<8x1xf32> to vector<8x16xf32>
    %296 = arith.select %293, %295, %291 : vector<8x16xi1>, vector<8x16xf32>
    %c0_81 = arith.constant 0 : index
    %c0_82 = arith.constant 0 : index
    %297 = vector.load %arg5[%c0_81, %c0_82] : memref<1x512xf32, #tpu.memory_space<vmem>>, vector<1x32xf32>
    %c0_83 = arith.constant 0 : index
    %c128 = arith.constant 128 : index
    %298 = vector.load %arg5[%c0_83, %c128] : memref<1x512xf32, #tpu.memory_space<vmem>>, vector<1x16xf32>
    %c0_84 = arith.constant 0 : index
    %c256 = arith.constant 256 : index
    %299 = vector.load %arg5[%c0_84, %c256] : memref<1x512xf32, #tpu.memory_space<vmem>>, vector<1x16xf32>
    %c0_85 = arith.constant 0 : index
    %c384 = arith.constant 384 : index
    %300 = vector.load %arg5[%c0_85, %c384] : memref<1x512xf32, #tpu.memory_space<vmem>>, vector<1x1xf32>
    %c0_86 = arith.constant 0 : index
    %c0_87 = arith.constant 0 : index
    %301 = vector.load %arg3[%c0_86, %c0_87] : memref<16x32xf32, #tpu.memory_space<vmem>>, vector<16x32xf32>
    %cst_88 = arith.constant dense<0.000000e+00> : vector<8x32xf32>
    %302 = tpu.matmul %296, %301, %cst_88 {dimension_numbers = #tpu.dot_dimension_numbers<[1], [0], [0], [1], [0, 0, 1, 1], [], []>} : vector<8x16xf32>, vector<16x32xf32>, vector<8x32xf32> -> vector<8x32xf32>
    %303 = vector.broadcast %297 : vector<1x32xf32> to vector<8x32xf32>
    %304 = arith.addf %302, %303 : vector<8x32xf32>
    %cst_89 = arith.constant 0.000000e+00 : f32
    %305 = vector.broadcast %cst_89 : f32 to vector<8x32xf32>
    %306 = arith.maximumf %304, %305 : vector<8x32xf32>
    %c0_90 = arith.constant 0 : index
    %c0_91 = arith.constant 0 : index
    %307 = vector.load %arg4[%c0_90, %c0_91] : memref<32x16xf32, #tpu.memory_space<vmem>>, vector<32x16xf32>
    %cst_92 = arith.constant dense<0.000000e+00> : vector<8x16xf32>
    %308 = tpu.matmul %306, %307, %cst_92 {dimension_numbers = #tpu.dot_dimension_numbers<[1], [0], [0], [1], [0, 0, 1, 1], [], []>} : vector<8x32xf32>, vector<32x16xf32>, vector<8x16xf32> -> vector<8x16xf32>
    %309 = vector.broadcast %298 : vector<1x16xf32> to vector<8x16xf32>
    %310 = arith.addf %308, %309 : vector<8x16xf32>
    %cst_93 = arith.constant 0.000000e+00 : f32
    %311 = vector.broadcast %cst_93 : f32 to vector<8x16xf32>
    %312 = arith.maximumf %310, %311 : vector<8x16xf32>
    %313 = vector.broadcast %299 : vector<1x16xf32> to vector<8x16xf32>
    %314 = arith.mulf %312, %313 : vector<8x16xf32>
    %cst_94 = arith.constant dense<0.000000e+00> : vector<8xf32>
    %315 = vector.multi_reduction <add>, %314, %cst_94 [1] : vector<8x16xf32> to vector<8xf32>
    %316 = vector.shape_cast %315 : vector<8xf32> to vector<8x1xf32>
    %317 = vector.broadcast %300 : vector<1x1xf32> to vector<8x1xf32>
    %318 = arith.addf %316, %317 : vector<8x1xf32>
    %c0_95 = arith.constant 0 : index
    %c0_96 = arith.constant 0 : index
    %319 = vector.load %arg6[%c0_95, %c0_96] : memref<8x1xf32, #tpu.memory_space<vmem>>, vector<8x1xf32>
    tpu.vector_store %arg6[%c0_95, %c0_96], %318 {strides = array<i32>} : memref<8x1xf32, #tpu.memory_space<vmem>>, vector<8x1xf32>,
    return
  }
  func.func @transform_0(%arg0: i32) -> (i32, i32) {
    %c0_i32 = arith.constant 0 : i32
    %c0_i32_0 = arith.constant 0 : i32
    return %arg0, %c0_i32 : i32, i32
  }
  func.func @transform_1(%arg0: i32) -> (i32, i32) {
    %c0_i32 = arith.constant 0 : i32
    %c0_i32_0 = arith.constant 0 : i32
    %c0_i32_1 = arith.constant 0 : i32
    return %c0_i32, %c0_i32_0 : i32, i32
  }
  func.func @transform_2(%arg0: i32) -> (i32, i32) {
    %c0_i32 = arith.constant 0 : i32
    %c0_i32_0 = arith.constant 0 : i32
    %c0_i32_1 = arith.constant 0 : i32
    return %c0_i32, %c0_i32_0 : i32, i32
  }
  func.func @transform_3(%arg0: i32) -> (i32, i32) {
    %c0_i32 = arith.constant 0 : i32
    %c0_i32_0 = arith.constant 0 : i32
    %c0_i32_1 = arith.constant 0 : i32
    return %c0_i32, %c0_i32_0 : i32, i32
  }
  func.func @transform_4(%arg0: i32) -> (i32, i32) {
    %c0_i32 = arith.constant 0 : i32
    %c0_i32_0 = arith.constant 0 : i32
    %c0_i32_1 = arith.constant 0 : i32
    return %c0_i32, %c0_i32_0 : i32, i32
  }
  func.func @transform_5(%arg0: i32) -> (i32, i32) {
    %c0_i32 = arith.constant 0 : i32
    %c0_i32_0 = arith.constant 0 : i32
    return %arg0, %c0_i32 : i32, i32
  }
}

</mosaic_0001>

<bundles_post_ra>
// kernel: tpu_custom_call.1
= control target key start
LH: loop header
LB: loop body
LE: loop exit
PB: predicated region body
PF: predicated region fallthrough
CT: control target
= control target key end

     0   :  { %10 = vsyncpa [#allocation3], 0  ;;  %s1106_s18 = smov 0   ;;  %s1387_s0 = inlined_call_operand.vmem [shape: f32[16,32], index: 0, kind: input, shape index: {}]   ;;  %s1388_s1 = inlined_call_operand.vmem [shape: f32[32,32], index: 1, kind: input, shape index: {}]   ;;  %s1389_s2 = inlined_call_operand.hbm [shape: f32[16,32], index: 2, kind: input, shape index: {}]   ;;  %s1390_s3 = inlined_call_operand.vmem [shape: f32[32,16], index: 3, kind: input, shape index: {}]   ;;  %s1391_s4 = inlined_call_operand.vmem [shape: f32[1,512], index: 4, kind: input, shape index: {}]   ;;  %s1392_s5 = inlined_call_operand.vmem [shape: f32[16,1], index: 5, kind: output, shape index: {}]  }
   0x1 LB: > { %s1112_s19 = sadd.s32 4294967295, %s1065_s18   ;;  %p915_p0 = scmp.ge.s32.totalorder %s1065_s18, 1  ;;  %s1065_s18 = sphi %s1106_s18, %s16_s18  }
   0x2   : > { %p157_p1 = scmp.lt.s32.totalorder %s1065_s18, 3  ;;  %s1067_s20 = smov [#allocation2]  }
   0x3   : > { %s172_s21 = sshll.u32 %s1067_s20, 4  ;;  %p1393_p3 = scmp.eq.s32.totalorder %s1112_s19, 0  ;;  %s173_s21 = int_to_ptr.vmem [resolvable:$true] %s172_s21 }
   0x4   : > { %p1116_p2 = pnand %p915_p0, %p157_p1  ;;  %s1027_s26 = scalar_lea.hbm %s1389_s2, 256 }
   0x5   : > { %p1028_p6 = scmp.ne.s32.totalorder %s1389_s2, %s1027_s26  ;;  %p1034_p10 = scmp.lt.u32.totalorder %s1027_s26, %s1389_s2 }
   0x6   : > { %s1395_s22 = scalar_select %p1116_p2, 1, 0 }
   0x7   : > { %p992_p4 = pneg %p1116_p2 }
   0x9   : > { %p1125_p5 = pnand %p1393_p3, %p992_p4 }
   0xb   : > { %p1029_p7 = pneg %p1125_p5 }
   0xd   : > { %p1030_p8 = pnand %p1029_p7, %p1028_p6 }
   0xf   : > { %p1031_p9 = pneg %p1030_p8 }
  0x11   : > { %p1036_p11 = pnand %p1034_p10, %p1031_p9 }
  0x13   : > { %1039 = shalt.err (!%p1036_p11)
}
  0x14   : > { %s1040_s6 = scalar_lea.vmem %s173_s21, 256  ;;  %p1048_p1 = scmp.lt.s32.totalorder %s173_s21, %s173_s21 }
  0x15   : > { %p1041_p12 = scmp.ne.s32.totalorder %s173_s21, %s1040_s6  ;;  %p1049_p4 = scmp.lt.s32.totalorder %s1040_s6, %s1040_s6 }
  0x17   : > { %p1043_p13 = pnand %p1041_p12, %p1029_p7  ;;  %p1050_p3 = por %p1049_p4, %p1048_p1 }
  0x19   : > { %p1044_p0 = pneg %p1043_p13 }
  0x1b   : > { %p1051_p2 = pnand %p1050_p3, %p1044_p0 }
  0x1d   : > { %1054 = shalt.err (!%p1051_p2)
}
  0x1e   : > { %s1068_s7 = smov 128   ;;  %s1069_s8 = smov 8  }
  0x1f   : > { %995 = dma.hbm_to_vmem [thread:$0]  (!%p1125_p5), %s1389_s2, 256, %s173_s21, [#allocation3], %s1068_s7, %s1068_s7, %s1069_s8  }
  0x20   : > { %p1397_p6 = scmp.ne.s32.totalorder %s1395_s22, 0 }
  0x21   : > { %p1398_p8 = scmp.eq.s32.totalorder (!%p1397_p6), %s1112_s19, 0 }
  0x22   : > { %201 = sbr.rel (%p1397_p6) target bundleno = 3535 (0xdcf), region = 40 }
  0x29   : > { %1060 = dma.done.wait (%p1398_p8), [#allocation3], 256   ;;  %p1399_p7 = pmov %p1398_p8 }
  0x2a   : > { %p227_p2 = scmp.lt.s32.totalorder %s1112_s19, 1  ;;  %v1070_v0 = vmov 0.0|0.0   ;;  %vm1071_vm0 = vmmov 0   ;;  %v1072_v1 = vmov 0.0   ;;  %v236_v2 = vld [vmem:[%s1388_s1] sm:$0xff]  ;;  %v237_v3 = vld [vmem:[%s1388_s1 + $0x8] sm:$0xff]  ;;  %v419_v14 = vlaneseq }
  0x2b   : > { %1062 = vsyncadd (%p1399_p7), [#allocation3], 4294967040  ;;  %973 = vmatprep.subr.bf16.mxu0 %v1070_v0  ;;  %952 = vmatprep.mubr.msk.f32.mxu0 %vm1071_vm0, %v1072_v1  ;;  %v238_v4 = vld [vmem:[%s1388_s1 + $0x10] sm:$0xff]  ;;  %v974_v5 = vpack.c.bf16 %v237_v3, %v236_v2  ;;  %v239_v6 = vld [vmem:[%s1388_s1 + $0x18] sm:$0xff]  ;;  %vm240_vm1 = vcmask 261120   ;;  %s1073_s25 = smov 112  }
  0x2c   : > { %979 = vmatprep.subr.bf16.mxu1 %v1070_v0  ;;  %959 = vmatprep.mubr.msk.f32.mxu1 %vm1071_vm0, %v1072_v1  ;;  %s1401_s19 = smov (!%p227_p2, %s1112_s19), 1  ;;  %v977_v7 = vpack.c.bf16 %v239_v6, %v238_v4  ;;  %v1186_v15 = vand.u32 127, %v419_v14  ;;  %vm427_vm5 = vcmask 130048   ;;  %s1074_s26 = smov 16  }
  0x2d   : > { %s920_s21 = sshll.u32 %s1401_s19, 3  ;;  %975 = vmatpush3.bf16.msra.mxu0 %v974_v5 }
  0x2e   : > { %976 = vmatprep.subr.bf16.mxu0 %v1070_v0  ;;  %s230_s24 = scalar_lea.vmem %s1387_s0, %s920_s21  ;;  %v423_v20 = vsub.s32 15, %v1186_v15  ;;  %vm425_vm4 = vcmp.ge.s32.totalorder %v1186_v15, 1  ;;  %s234_s23 = scalar_lea.vmem %s1392_s5, %s920_s21 }
  0x2f   : > { %v235_v8 = vld [vmem:[%s230_s24] sm:$0xff] }
  0x31   : > { %978 = vmatpush3.bf16.msra.mxu0 %v977_v7 }
  0x34   : > { %953 = vmatmul.mubr.msk.f32.vlgmr.msra.gmra.mrb[0].mxu0 %vm240_vm1, %v235_v8 }
 0x107   : > { %v1181_v9 = vpop.f32.mrb[0].mxu0 }
 0x108   : > { %v954_v10 = vpop.f32.mrb[1].mxu0  ;;  %v314_v11 = vmul.f32 %v1181_v9, %v1181_v9 }
 0x10a   : > { %316 = vrot.lane.b32.xlu0 %v314_v11, %s1073_s25 }
 0x17c   : > { %v317_v12 = vpop.permute.xlu0 %316 }
 0x17d   : > { %v319_v13 = vadd.f32 %v317_v12, %v314_v11 }
 0x17f   : > { %1015 = vrsqrt.f32 %v319_v13  ;;  %vm322_vm2 = vcmp.eq.f32.partialorder %v319_v13, inf  ;;  %v325_v18 = vand.u32 2147483648, %v319_v13  ;;  %vm324_vm3 = vcmp.eq.f32.partialorder %v319_v13, 0.0 }
 0x189   : > { %v1016_v16 = vpop.eup %1015 }
 0x18a   : > { %v321_v17 = vmul.f32 %v1016_v16, %v319_v13 }
 0x18c   : > { %v323_v19 = vsel %vm322_vm2, %v319_v13, %v321_v17 }
 0x18d   : > { %v326_v21 = vsel %vm324_vm3, %v325_v18, %v323_v19 }
 0x18e   : > { %v422_v22 = vand.u32 4294967280, %v326_v21 }
 0x190   : > { %v424_v23 = vor.u32 %v423_v20, %v422_v22 }
 0x192   : > { %v426_v24 = vsel %vm425_vm4, %v424_v23, 4294967295 }
 0x193   : > { %v428_v25 = vsel %vm427_vm5, %v426_v24, 2147483648 }
 0x194   : > { %v430_v26 = vshra.s32 %v428_v25, 16  ;;  %v429_v28 = vand.u32 65535, %v428_v25 }
 0x196   : > { %v432_v27 = vcvt.s32.f32 %v430_v26  ;;  %v431_v30 = vcvt.s32.f32 %v429_v28 }
 0x198   : > { %433 = vmax.xlane.f32.xlu0 %v432_v27 }
 0x225   : > { %v434_v29 = vpop.xlane.xlu0 %433 }
 0x226   : > { %vm435_vm6 = vcmp.eq.f32.partialorder %v432_v27, %v434_v29  ;;  %v440_v32 = vcvt.f32.s32 %v434_v29 }
 0x227   : > { %v436_v31 = vsel %vm435_vm6, %v431_v30, -inf }
 0x228   : > { %437 = vmax.xlane.f32.xlu1 %v436_v31  ;;  %v441_v34 = vshll.u32 %v440_v32, 16  ;;  %v1236_v32 = vand.u32 2147483647, %v1181_v9 }
 0x2b5   : > { %v438_v33 = vpop.xlane.xlu1 %437 }
 0x2b6   : > { %v439_v35 = vcvt.f32.s32 %v438_v33 }
 0x2b8   : > { %v1191_v36 = vadd.s32 %v441_v34, %v439_v35 }
 0x2ba   : > { %v443_v37 = vand.u32 15, %v1191_v36 }
 0x2bc   : > { %v1194_v38 = vsub.s32 15, %v443_v37 }
 0x2be   : > { %vm445_vm7 = vcmp.eq.s32.totalorder %v1186_v15, %v1194_v38 }
 0x2bf   : > { %v456_v39 = vsel %vm445_vm7, 4294967295, %v426_v24 }
 0x2c0   : > { %v457_v40 = vsel %vm427_vm5, %v456_v39, 2147483648 }
 0x2c1   : > { %v459_v41 = vshra.s32 %v457_v40, 16  ;;  %v458_v43 = vand.u32 65535, %v457_v40 }
 0x2c3   : > { %v461_v42 = vcvt.s32.f32 %v459_v41  ;;  %v460_v45 = vcvt.s32.f32 %v458_v43 }
 0x2c5   : > { %462 = vmax.xlane.f32.xlu1 %v461_v42 }
 0x352   : > { %v463_v44 = vpop.xlane.xlu1 %462 }
 0x353   : > { %vm464_vm8 = vcmp.eq.f32.partialorder %v461_v42, %v463_v44  ;;  %v469_v47 = vcvt.f32.s32 %v463_v44 }
 0x354   : > { %v465_v46 = vsel %vm464_vm8, %v460_v45, -inf }
 0x355   : > { %466 = vmax.xlane.f32.xlu1 %v465_v46  ;;  %v470_v49 = vshll.u32 %v469_v47, 16 }
 0x3e2   : > { %v467_v48 = vpop.xlane.xlu1 %466 }
 0x3e3   : > { %v468_v50 = vcvt.f32.s32 %v467_v48 }
 0x3e5   : > { %v1202_v51 = vadd.s32 %v470_v49, %v468_v50 }
 0x3e7   : > { %v472_v52 = vand.u32 15, %v1202_v51 }
 0x3e9   : > { %v1205_v53 = vsub.s32 15, %v472_v52 }
 0x3eb   : > { %vm474_vm9 = vcmp.eq.s32.totalorder %v1186_v15, %v1205_v53 }
 0x3ec   : > { %v485_v54 = vsel %vm474_vm9, 4294967295, %v456_v39 }
 0x3ed   : > { %v486_v55 = vsel %vm427_vm5, %v485_v54, 2147483648 }
 0x3ee   : > { %v488_v56 = vshra.s32 %v486_v55, 16  ;;  %v487_v58 = vand.u32 65535, %v486_v55 }
 0x3f0   : > { %v490_v57 = vcvt.s32.f32 %v488_v56  ;;  %v489_v60 = vcvt.s32.f32 %v487_v58 }
 0x3f2   : > { %491 = vmax.xlane.f32.xlu1 %v490_v57 }
 0x47f   : > { %v492_v59 = vpop.xlane.xlu1 %491 }
 0x480   : > { %vm493_vm10 = vcmp.eq.f32.partialorder %v490_v57, %v492_v59  ;;  %v498_v62 = vcvt.f32.s32 %v492_v59 }
 0x481   : > { %v494_v61 = vsel %vm493_vm10, %v489_v60, -inf }
 0x482   : > { %495 = vmax.xlane.f32.xlu1 %v494_v61  ;;  %v499_v2 = vshll.u32 %v498_v62, 16 }
 0x50f   : > { %v496_v63 = vpop.xlane.xlu1 %495 }
 0x510   : > { %v497_v3 = vcvt.f32.s32 %v496_v63 }
 0x512   : > { %v1213_v4 = vadd.s32 %v499_v2, %v497_v3 }
 0x514   : > { %v501_v5 = vand.u32 15, %v1213_v4 }
 0x516   : > { %v1216_v6 = vsub.s32 15, %v501_v5 }
 0x518   : > { %vm503_vm11 = vcmp.eq.s32.totalorder %v1186_v15, %v1216_v6 }
 0x519   : > { %v514_v7 = vsel %vm503_vm11, 4294967295, %v485_v54 }
 0x51a   : > { %v515_v8 = vsel %vm427_vm5, %v514_v7, 2147483648 }
 0x51b   : > { %v517_v10 = vshra.s32 %v515_v8, 16  ;;  %v516_v12 = vand.u32 65535, %v515_v8 }
 0x51d   : > { %v519_v11 = vcvt.s32.f32 %v517_v10  ;;  %v518_v14 = vcvt.s32.f32 %v516_v12 }
 0x51f   : > { %520 = vmax.xlane.f32.xlu1 %v519_v11 }
 0x5ac   : > { %v521_v13 = vpop.xlane.xlu1 %520 }
 0x5ad   : > { %vm522_vm12 = vcmp.eq.f32.partialorder %v519_v11, %v521_v13  ;;  %v527_v17 = vcvt.f32.s32 %v521_v13 }
 0x5ae   : > { %v523_v16 = vsel %vm522_vm12, %v518_v14, -inf }
 0x5af   : > { %524 = vmax.xlane.f32.xlu1 %v523_v16  ;;  %v528_v19 = vshll.u32 %v527_v17, 16 }
 0x63c   : > { %v525_v18 = vpop.xlane.xlu1 %524 }
 0x63d   : > { %v526_v20 = vcvt.f32.s32 %v525_v18 }
 0x63f   : > { %v1224_v21 = vadd.s32 %v528_v19, %v526_v20 }
 0x641   : > { %v530_v22 = vand.u32 15, %v1224_v21 }
 0x643   : > { %v1227_v23 = vsub.s32 15, %v530_v22 }
 0x645   : > { %vm532_vm13 = vcmp.eq.s32.totalorder %v1186_v15, %v1227_v23 }
 0x646   : > { %v543_v24 = vsel %vm532_vm13, 4294967295, %v514_v7 }
 0x647   : > { %v544_v25 = vsel %vm427_vm5, %v543_v24, 2147483648 }
 0x648   : > { %v546_v26 = vshra.s32 %v544_v25, 16  ;;  %v545_v28 = vand.u32 65535, %v544_v25 }
 0x64a   : > { %v548_v27 = vcvt.s32.f32 %v546_v26  ;;  %v547_v30 = vcvt.s32.f32 %v545_v28 }
 0x64c   : > { %549 = vmax.xlane.f32.xlu1 %v548_v27 }
 0x6d9   : > { %v550_v29 = vpop.xlane.xlu1 %549 }
 0x6da   : > { %vm551_vm14 = vcmp.eq.f32.partialorder %v548_v27, %v550_v29  ;;  %v556_v33 = vcvt.f32.s32 %v550_v29 }
 0x6db   : > { %v552_v31 = vsel %vm551_vm14, %v547_v30, -inf }
 0x6dc   : > { %553 = vmax.xlane.f32.xlu1 %v552_v31  ;;  %v557_v35 = vshll.u32 %v556_v33, 16 }
 0x6ed   : > { %329 = vrot.lane.b32.xlu1 %v1236_v32, %s1073_s25 }
 0x769   : > { %v554_v34 = vpop.xlane.xlu1 %553 }
 0x76a   : > { %v555_v37 = vcvt.f32.s32 %v554_v34 }
 0x76c   : > { %v1240_v39 = vadd.s32 %v557_v35, %v555_v37 }
 0x76d   : > { %v330_v40 = vpop.permute.xlu1 %329 }
 0x76e   : > { %v559_v41 = vand.u32 15, %v1240_v39  ;;  %v332_v42 = vmax.f32 %v1236_v32, %v330_v40  ;;  %v333_v49 = vmin.f32 %v1236_v32, %v330_v40 }
 0x770   : > { %v1244_v43 = vsub.s32 15, %v559_v41  ;;  %vm334_vm15 = vcmp.eq.f32.partialorder %v332_v42, 0.0 }
 0x771   : > { %v335_v44 = vsel %vm334_vm15, 1.0, %v332_v42 }
 0x772   : > { %1017 = vrcp.f32 %v335_v44  ;;  %vm561_vm2 = vcmp.eq.s32.totalorder %v1186_v15, %v1244_v43 }
 0x773   : > { %v1251_v45 = vsel %vm561_vm2, 4294967295, %v543_v24 }
 0x774   : > { %v573_v46 = vsel %vm427_vm5, %v1251_v45, 2147483648 }
 0x775   : > { %v575_v47 = vshra.s32 %v573_v46, 16  ;;  %v574_v30 = vand.u32 65535, %v573_v46 }
 0x777   : > { %v577_v48 = vcvt.s32.f32 %v575_v47  ;;  %v576_v33 = vcvt.s32.f32 %v574_v30 }
 0x779   : > { %578 = vmax.xlane.f32.xlu0 %v577_v48 }
 0x77c   : > { %v1018_v50 = vpop.eup %1017 }
 0x77d   : > { %v337_v52 = vmul.f32 %v1018_v50, %v333_v49 }
 0x77f   : > { %v338_v54 = vmul.f32 %v337_v52, %v337_v52 }
 0x781   : > { %v339_v55 = vadd.f32 1.0, %v338_v54 }
 0x783   : > { %1019 = vrsqrt.f32 %v339_v55  ;;  %vm342_vm3 = vcmp.eq.f32.partialorder %v339_v55, inf  ;;  %v345_v58 = vand.u32 2147483648, %v339_v55  ;;  %vm344_vm4 = vcmp.eq.f32.partialorder %v339_v55, 0.0 }
 0x78d   : > { %v1020_v56 = vpop.eup %1019 }
 0x78e   : > { %v341_v57 = vmul.f32 %v1020_v56, %v339_v55 }
 0x790   : > { %v343_v59 = vsel %vm342_vm3, %v339_v55, %v341_v57  ;;  %vm387_vm3 = vcmp.lt.f32.partialorder %v1181_v9, 0.0 }
 0x791   : > { %v346_v60 = vsel %vm344_vm4, %v345_v58, %v343_v59 }
 0x792   : > { %v347_v61 = vadd.f32 1.0, %v346_v60 }
 0x794   : > { %1021 = vrcp.f32 %v347_v61 }
 0x79e   : > { %v1022_v62 = vpop.eup %1021 }
 0x79f   : > { %v349_v63 = vmul.f32 %v1022_v62, %v337_v52 }
 0x7a1   : > { %v350_v2 = vmul.f32 %v349_v63, %v349_v63 }
 0x7a3   : > { %v351_v3 = vadd.f32 1.0, %v350_v2 }
 0x7a5   : > { %1023 = vrsqrt.f32 %v351_v3  ;;  %vm354_vm6 = vcmp.eq.f32.partialorder %v351_v3, inf  ;;  %v357_v8 = vand.u32 2147483648, %v351_v3  ;;  %vm356_vm8 = vcmp.eq.f32.partialorder %v351_v3, 0.0 }
 0x7af   : > { %v1024_v5 = vpop.eup %1023 }
 0x7b0   : > { %v353_v7 = vmul.f32 %v1024_v5, %v351_v3 }
 0x7b2   : > { %v355_v10 = vsel %vm354_vm6, %v351_v3, %v353_v7  ;;  %vm408_vm6 = vcmp.eq.f32.partialorder %v1181_v9, 0.0 }
 0x7b3   : > { %v358_v11 = vsel %vm356_vm8, %v357_v8, %v355_v10 }
 0x7b4   : > { %v359_v12 = vadd.f32 1.0, %v358_v11 }
 0x7b6   : > { %1025 = vrcp.f32 %v359_v12 }
 0x7c0   : > { %v1026_v13 = vpop.eup %1025 }
 0x7c1   : > { %v361_v14 = vmul.f32 %v1026_v13, %v349_v63 }
 0x7c3   : > { %v362_v16 = vmul.f32 %v361_v14, %v361_v14 }
 0x7c5   : > { %v363_v17 = vmul.f32 0.11111111, %v362_v16 }
 0x7c7   : > { %v364_v18 = vadd.f32 -0.14285715, %v363_v17  ;;  %v1075_v17 = vmov 0  }
 0x7c9   : > { %v365_v19 = vmul.f32 %v364_v18, %v362_v16  ;;  %v409_v18 = vsel %vm408_vm6, 1, %v1075_v17 }
 0x7cb   : > { %v366_v20 = vadd.f32 0.2, %v365_v19 }
 0x7cd   : > { %v367_v22 = vmul.f32 %v366_v20, %v362_v16 }
 0x7cf   : > { %v368_v24 = vadd.f32 -0.33333334, %v367_v22 }
 0x7d1   : > { %v369_v25 = vmul.f32 %v368_v24, %v362_v16 }
 0x7d3   : > { %v370_v26 = vadd.f32 1.0, %v369_v25 }
 0x7d5   : > { %v371_v27 = vmul.f32 %v370_v26, %v361_v14 }
 0x7d7   : > { %v372_v28 = vmul.f32 4.0, %v371_v27 }
 0x7d9   : > { %v377_v29 = vsub.f32 1.5707964, %v372_v28 }
 0x7db   : > { %379 = vrot.lane.b32.xlu1 %v377_v29, %s1074_s26 }
 0x7df   : > { %383 = vrot.lane.b32.xlu1 %v372_v28, %s1074_s26 }
 0x806   : > { %v579_v31 = vpop.xlane.xlu0 %578 }
 0x807   : > { %vm580_vm10 = vcmp.eq.f32.partialorder %v577_v48, %v579_v31  ;;  %v585_v35 = vcvt.f32.s32 %v579_v31 }
 0x808   : > { %v581_v34 = vsel %vm580_vm10, %v576_v33, -inf }
 0x809   : > { %582 = vmax.xlane.f32.xlu0 %v581_v34  ;;  %v586_v40 = vshll.u32 %v585_v35, 16 }
 0x84d   : > { %v380_v54 = vpop.permute.xlu1 %379 }
 0x851   : > { %v384_v59 = vpop.permute.xlu1 %383 }
 0x896   : > { %v583_v37 = vpop.xlane.xlu0 %582 }
 0x897   : > { %v584_v41 = vcvt.f32.s32 %v583_v37 }
 0x899   : > { %v1258_v42 = vadd.s32 %v586_v40, %v584_v41 }
 0x89b   : > { %v588_v44 = vand.u32 15, %v1258_v42 }
 0x89d   : > { %v1261_v47 = vsub.s32 15, %v588_v44 }
 0x89f   : > { %vm590_vm12 = vcmp.eq.s32.totalorder %v1186_v15, %v1261_v47 }
 0x8a0   : > { %v601_v46 = vsel %vm590_vm12, 4294967295, %v1251_v45 }
 0x8a1   : > { %v602_v48 = vsel %vm427_vm5, %v601_v46, 2147483648 }
 0x8a2   : > { %v604_v49 = vshra.s32 %v602_v48, 16  ;;  %v603_v52 = vand.u32 65535, %v602_v48 }
 0x8a4   : > { %v606_v50 = vcvt.s32.f32 %v604_v49  ;;  %v605_v56 = vcvt.s32.f32 %v603_v52 }
 0x8a6   : > { %607 = vmax.xlane.f32.xlu0 %v606_v50 }
 0x8bc   : > { %373 = vrot.lane.b32.xlu0 %v1236_v32, %s1074_s26 }
 0x933   : > { %v608_v55 = vpop.xlane.xlu0 %607 }
 0x934   : > { %vm609_vm14 = vcmp.eq.f32.partialorder %v606_v50, %v608_v55  ;;  %v614_v3 = vcvt.f32.s32 %v608_v55 }
 0x935   : > { %v610_v57 = vsel %vm609_vm14, %v605_v56, -inf }
 0x936   : > { %611 = vmax.xlane.f32.xlu1 %v610_v57  ;;  %v615_v7 = vshll.u32 %v614_v3, 16  ;;  %v504_v3 = vand.u32 4294967280, %v1213_v4 }
 0x937   : > { %v374_v58 = vpop.permute.xlu0 %373 }
 0x938   : > { %vm376_vm15 = vcmp.gt.f32.partialorder %v1236_v32, %v374_v58  ;;  %v663_v58 = vld [vmem:[#allocation2] sm:$0xff] }
 0x939   : > { %v386_v45 = vsel %vm376_vm15, %v380_v54, %v384_v59  ;;  %v664_v59 = vld [vmem:[#allocation2 + $0x8] sm:$0xff]  ;;  %vm512_vm15 = vcmp.eq.s32.totalorder %v1186_v15, 10 }
 0x93a   : > { %v388_v60 = vsub.f32 3.1415927, %v386_v45  ;;  %v980_v47 = vpack.c.bf16 %v664_v59, %v663_v58 }
 0x93c   : > { %390 = vrot.lane.b32.xlu0 %v388_v60, %s1073_s25  ;;  %981 = vmatpush3.bf16.msra.mxu1 %v980_v47  ;;  %v475_v60 = vand.u32 4294967280, %v1202_v51 }
 0x93d   : > { %982 = vmatprep.subr.bf16.mxu1 %v1070_v0 }
 0x940   : > { %394 = vrot.lane.b32.xlu0 %v386_v45, %s1073_s25  ;;  %v446_v45 = vand.u32 4294967280, %v1191_v36 }
 0x9ae   : > { %v391_v61 = vpop.permute.xlu0 %390 }
 0x9b2   : > { %v395_v62 = vpop.permute.xlu0 %394 }
 0x9b3   : > { %v397_v63 = vsel %vm387_vm3, %v391_v61, %v395_v62 }
 0x9b4   : > { %v398_v2 = vsub.f32 0.0, %v397_v63 }
 0x9b6   : > { %400 = vrot.lane.b32.xlu1 %v398_v2, %s1074_s26 }
 0x9c3   : > { %v612_v5 = vpop.xlane.xlu1 %611 }
 0x9c4   : > { %v613_v32 = vcvt.f32.s32 %v612_v5 }
 0x9c6   : > { %v1279_v8 = vadd.s32 %v615_v7, %v613_v32  ;;  %v533_v7 = vand.u32 4294967280, %v1224_v21 }
 0x9c8   : > { %v617_v10 = vand.u32 15, %v1279_v8 }
 0x9ca   : > { %v618_v11 = vsub.s32 15, %v617_v10 }
 0x9cc   : > { %vm619_vm4 = vcmp.eq.s32.totalorder %v1186_v15, %v618_v11 }
 0x9cd   : > { %v630_v12 = vsel %vm619_vm4, 4294967295, %v601_v46 }
 0x9ce   : > { %v631_v13 = vsel %vm427_vm5, %v630_v12, 2147483648  ;;  %v562_v12 = vand.u32 4294967280, %v1240_v39 }
 0x9cf   : > { %v633_v14 = vshra.s32 %v631_v13, 16  ;;  %v632_v19 = vand.u32 65535, %v631_v13 }
 0x9d1   : > { %v635_v16 = vcvt.s32.f32 %v633_v14  ;;  %v634_v22 = vcvt.s32.f32 %v632_v19  ;;  %v620_v19 = vand.u32 4294967280, %v1279_v8 }
 0x9d3   : > { %636 = vmax.xlane.f32.xlu0 %v635_v16 }
 0x9e9   : > { %404 = vrot.lane.b32.xlu0 %v397_v63, %s1074_s26 }
 0x9ed   : > { %410 = vrot.lane.b32.xlu0 %v409_v18, %s1073_s25 }
 0xa28   : > { %v401_v25 = vpop.permute.xlu1 %400 }
 0xa60   : > { %v637_v20 = vpop.xlane.xlu0 %636 }
 0xa61   : > { %vm638_vm8 = vcmp.eq.f32.partialorder %v635_v16, %v637_v20  ;;  %v643_v49 = vcvt.f32.s32 %v637_v20  ;;  %v591_v16 = vand.u32 4294967280, %v1258_v42 }
 0xa62   : > { %v639_v24 = vsel %vm638_vm8, %v634_v22, -inf  ;;  %vm570_vm8 = vcmp.eq.s32.totalorder %v1186_v15, 12 }
 0xa63   : > { %640 = vmax.xlane.f32.xlu1 %v639_v24  ;;  %v644_v50 = vshll.u32 %v643_v49, 16 }
 0xa64   : > { %v405_v26 = vpop.permute.xlu0 %404 }
 0xa65   : > { %v407_v27 = vsel %vm387_vm3, %v401_v25, %v405_v26  ;;  %vm539_vm3 = vcmp.eq.s32.totalorder %v1186_v15, 3 }
 0xa66   : > { %415 = vrot.lane.b32.xlu0 %v407_v27, %s1073_s25  ;;  %v745_v27 = vld [vmem:[%s1390_s3] sm:$0xff] }
 0xa68   : > { %v411_v28 = vpop.permute.xlu0 %410 }
 0xa69   : > { %vm412_vm10 = vcmp.ne.s32.totalorder %v411_v28, 0  ;;  %v746_v28 = vld [vmem:[%s1390_s3 + $0x8] sm:$0xff] }
 0xa6a   : > { %vm413_vm14 = vmand %vm408_vm6, %vm412_vm10  ;;  %vm568_vm6 = vcmp.eq.s32.totalorder %v1186_v15, 4  ;;  %vm597_vm10 = vcmp.eq.s32.totalorder %v1186_v15, 5  ;;  %v983_v8 = vpack.c.bf16 %v746_v28, %v745_v27 }
 0xad8   : > { %v416_v29 = vpop.permute.xlu0 %415 }
 0xad9   : > { %v418_v30 = vsel %vm413_vm14, 0.0, %v416_v29  ;;  %vm599_vm14 = vcmp.eq.s32.totalorder %v1186_v15, 13 }
 0xada   : > { %v477_v31 = vsel %vm474_vm9, %v418_v30, 0.0  ;;  %v448_v33 = vsel %vm445_vm7, %v418_v30, 0.0  ;;  %v506_v9 = vsel %vm503_vm11, %v418_v30, 0.0  ;;  %v622_v37 = vsel %vm619_vm4, %v418_v30, 0.0 }
 0xadb   : > { %v478_v34 = vsel %vm427_vm5, %v477_v31, 0.0  ;;  %v449_v35 = vsel %vm427_vm5, %v448_v33, 0.0  ;;  %v507_v53 = vsel %vm427_vm5, %v506_v9, 0.0  ;;  %v623_v40 = vsel %vm427_vm5, %v622_v37, 0.0  ;;  %v747_v31 = vld [vmem:[%s1390_s3 + $0x10] sm:$0xff]  ;;  %v748_v33 = vld [vmem:[%s1390_s3 + $0x18] sm:$0xff] }
 0xadc   : > { %479 = vadd.xlane.f32.xlu1 %v478_v34  ;;  %450 = vadd.xlane.f32.xlu0 %v449_v35  ;;  %v535_v38 = vsel %vm532_vm13, %v418_v30, 0.0  ;;  %v564_v6 = vsel %vm561_vm2, %v418_v30, 0.0  ;;  %v593_v46 = vsel %vm590_vm12, %v418_v30, 0.0  ;;  %vm452_vm9 = vcmp.eq.s32.totalorder %v1186_v15, 0  ;;  %v923_v34 = vld [vmem:[%s1391_s4] ss:$0 sm:$0xff] }
 0xadd   : > { %v536_v41 = vsel %vm427_vm5, %v535_v38, 0.0  ;;  %v565_v44 = vsel %vm427_vm5, %v564_v6, 0.0  ;;  %v594_v48 = vsel %vm427_vm5, %v593_v46, 0.0  ;;  %vm454_vm11 = vcmp.eq.s32.totalorder %v1186_v15, 8 }
 0xade   : > { %vm481_vm13 = vcmp.eq.s32.totalorder %v1186_v15, 1  ;;  %v453_v61 = vsel %vm452_vm9, %v446_v45, 0.0  ;;  %vm483_vm2 = vcmp.eq.s32.totalorder %v1186_v15, 9  ;;  %vm510_vm12 = vcmp.eq.s32.totalorder %v1186_v15, 2 }
 0xadf   : > { %vm541_vm4 = vcmp.eq.s32.totalorder %v1186_v15, 11  ;;  %vm628_vm9 = vcmp.eq.s32.totalorder %v1186_v15, 14 }
 0xae0   : > { %508 = vadd.xlane.f32.xlu1 %v507_v53  ;;  %624 = vadd.xlane.f32.xlu0 %v623_v40 }
 0xae4   : > { %537 = vadd.xlane.f32.xlu1 %v536_v41  ;;  %v927_v41 = vld [vmem:[%s1391_s4 + $0x2] ss:$0 sm:$0xff] }
 0xae8   : > { %566 = vadd.xlane.f32.xlu1 %v565_v44 }
 0xaec   : > { %595 = vadd.xlane.f32.xlu1 %v594_v48  ;;  %v928_v48 = vld [vmem:[%s1391_s4 + $0x3] ss:$0 sm:$0xff] }
 0xaf0   : > { %v641_v23 = vpop.xlane.xlu1 %640 }
 0xaf1   : > { %v642_v52 = vcvt.f32.s32 %v641_v23 }
 0xaf3   : > { %v645_v54 = vadd.s32 %v644_v50, %v642_v52 }
 0xaf5   : > { %v646_v55 = vand.u32 15, %v645_v54  ;;  %v649_v22 = vand.u32 4294967280, %v645_v54 }
 0xaf7   : > { %v647_v56 = vsub.s32 15, %v646_v55 }
 0xaf9   : > { %vm648_vm7 = vcmp.eq.s32.totalorder %v1186_v15, %v647_v56 }
 0xafa   : > { %v651_v43 = vsel %vm648_vm7, %v418_v30, 0.0  ;;  %vm626_vm7 = vcmp.eq.s32.totalorder %v1186_v15, 6 }
 0xafb   : > { %v652_v57 = vsel %vm427_vm5, %v651_v43, 0.0 }
 0xafc   : > { %653 = vadd.xlane.f32.xlu1 %v652_v57 }
 0xb69   : > { %v451_v62 = vpop.xlane.xlu0 %450  ;;  %v480_v63 = vpop.xlane.xlu1 %479 }
 0xb6a   : > { %v455_v2 = vsel %vm454_vm11, %v451_v62, %v453_v61  ;;  %vm655_vm11 = vcmp.eq.s32.totalorder %v1186_v15, 7 }
 0xb6b   : > { %v482_v5 = vsel %vm481_vm13, %v475_v60, %v455_v2  ;;  %vm657_vm13 = vcmp.eq.s32.totalorder %v1186_v15, 15  ;;  %v986_v15 = vpack.c.bf16 %v748_v33, %v747_v31 }
 0xb6c   : > { %v484_v36 = vsel %vm483_vm2, %v480_v63, %v482_v5 }
 0xb6d   : > { %v511_v32 = vsel %vm510_vm12, %v504_v3, %v484_v36  ;;  %v509_v51 = vpop.xlane.xlu1 %508  ;;  %v625_v24 = vpop.xlane.xlu0 %624 }
 0xb6e   : > { %v513_v10 = vsel %vm512_vm15, %v509_v51, %v511_v32 }
 0xb6f   : > { %v540_v11 = vsel %vm539_vm3, %v533_v7, %v513_v10 }
 0xb71   : > { %v538_v13 = vpop.xlane.xlu1 %537 }
 0xb72   : > { %v542_v4 = vsel %vm541_vm4, %v538_v13, %v540_v11 }
 0xb73   : > { %v569_v14 = vsel %vm568_vm6, %v562_v12, %v542_v4 }
 0xb75   : > { %v567_v21 = vpop.xlane.xlu1 %566 }
 0xb76   : > { %v571_v17 = vsel %vm570_vm8, %v567_v21, %v569_v14 }
 0xb77   : > { %v598_v18 = vsel %vm597_vm10, %v591_v16, %v571_v17 }
 0xb79   : > { %v596_v20 = vpop.xlane.xlu1 %595 }
 0xb7a   : > { %v600_v39 = vsel %vm599_vm14, %v596_v20, %v598_v18 }
 0xb7b   : > { %v627_v25 = vsel %vm626_vm7, %v620_v19, %v600_v39 }
 0xb7c   : > { %v629_v26 = vsel %vm628_vm9, %v625_v24, %v627_v25 }
 0xb7d   : > { %v656_v42 = vsel %vm655_vm11, %v649_v22, %v629_v26 }
 0xb89   : > { %v654_v29 = vpop.xlane.xlu1 %653 }
 0xb8a   : > { %v658_v30 = vsel %vm657_vm13, %v654_v29, %v656_v42 }
 0xb8b   : > { %960 = vmatmul.mubr.msk.f32.vlgmr.msra.gmra.mrb[0].mxu1 %vm427_vm5, %v658_v30 }
 0xb8c   : > { %984 = vmatpush3.bf16.msra.mxu1 %v983_v8  ;;  %970 = vmatprep.mubr.msk.f32.mxu1 %vm1071_vm0, %v1072_v1  ;;  %vm846_vm0 = vcmask 7168  }
 0xb8d   : > { %985 = vmatprep.subr.bf16.mxu1 %v1070_v0  ;;  %v925_v0 = vld [vmem:[%s1391_s4 + $0x1] ss:$0 sm:$0xff] }
 0xb90   : > { %987 = vmatpush3.bf16.msra.mxu1 %v986_v15 }
 0xc5e   : > { %v740_v35 = vpop.f32.mrb[0].mxu1 }
 0xc5f   : > { %v741_v9 = vadd.f32 %v923_v34, %v740_v35  ;;  %v961_v1 = vpop.f32.mrb[1].mxu1 }
 0xc61   : > { %v744_v37 = vmax.f32 %v741_v9, 0.0 }
 0xc63   : > { %971 = vmatmul.mubr.msk.f32.vlgmr.msra.gmra.mrb[2].mxu1 %vm240_vm1, %v744_v37 }
 0xd36   : > { %v824_v53 = vpop.f32.mrb[2].mxu1 }
 0xd37   : > { %v825_v40 = vadd.f32 %v925_v0, %v824_v53  ;;  %v972_v38 = vpop.f32.mrb[3].mxu1 }
 0xd39   : > { %v828_v6 = vmax.f32 %v825_v40, 0.0 }
 0xd3b   : > { %v835_v44 = vmul.f32 %v927_v41, %v828_v6 }
 0xd3d   : > { %v836_v46 = vsel %vm427_vm5, %v835_v44, 0.0 }
 0xd3e   : > { %837 = vadd.xlane.f32.xlu0 %v836_v46 }
 0xdcb   : > { %v838_v49 = vpop.xlane.xlu0 %837 }
 0xdcc   : > { %v845_v23 = vadd.f32 %v928_v48, %v838_v49 }
 0xdce   : > { %847 = vst.msk [vmem:[%s234_s23] sm:$0xff] %vm846_vm0, %v845_v23 }
 0xdcf PF: > { %s16_s18 = sadd.s32 1, %s1065_s18  }
 0xdd0   : > { %p13_p3 = scmp.ge.s32.totalorder %s16_s18, 4  }
 0xdd2   :  { %15 = sbr.rel (!%p13_p3) target bundleno = 1 (0x1), region = 75 }
 0xdd9   :  { %867 = vsyncpa [#allocation3], 1 }
 0xdda   :  { %869 = vsyncpa [#allocation3 + $0x1], 1 }

</bundles_post_ra>
